<compile_context>
chip_gen: v5e
topology: v5e:2x2
jax: 0.10.0
libtpu: 0.0.40
codegen_flags: <defaults>
</compile_context>

<pallas_src>
import functools

import jax
import jax.numpy as jnp
from jax.experimental import pallas as pl
from jax.experimental.pallas import tpu as pltpu

_LANES = 128
_SUBLANES = 8


def _ceil_div(a, b):
    return -(-a // b)


def _round_up(a, b):
    return _ceil_div(a, b) * b


def _focal_bce_kernel(x_ref, t_ref, acc_ref, *,
                      alpha, gamma, bce_weight, focal_weight,
                      n_valid, needs_mask):
    """Grid axis 0 walks row tiles of the flattened (rows, 128) input.

    acc_ref is the (8, 128) VMEM output block, revisited every step
    (same block index for all i) -> acts as a carried accumulator.
    """
    i = pl.program_id(0)

    @pl.when(i == 0)
    def _():
        acc_ref[...] = jnp.zeros_like(acc_ref)

    x = x_ref[...]
    t = t_ref[...]

    # Single EUP exp, reused for BCE and sigmoid.
    e = jnp.exp(-jnp.abs(x))

    # Numerically stable BCE-with-logits (same formula PyTorch uses).
    bce = jnp.maximum(x, 0.0) - x * t + jnp.log1p(e)

    # sigmoid(x) from e:  x >= 0 -> 1/(1+e),  x < 0 -> e/(1+e)
    p = jnp.where(x >= 0.0, 1.0, e) / (1.0 + e)
    p_t = p * t + (1.0 - p) * (1.0 - t)
    one_m_pt = 1.0 - p_t

    # Static gamma specialization (gamma is a Python float at trace time).
    if gamma == 2.0:
        pow_term = one_m_pt * one_m_pt
    elif float(gamma) == int(gamma) and 0 <= int(gamma) <= 4:
        pow_term = jnp.ones_like(one_m_pt)
        for _ in range(int(gamma)):
            pow_term = pow_term * one_m_pt
    else:
        pow_term = jnp.power(one_m_pt, gamma)

    alpha_t = alpha * t + (1.0 - alpha) * (1.0 - t)

    # bce_weight*bce + focal_weight*alpha_t*bce*pow_term, factored.
    combined = bce * (bce_weight + focal_weight * alpha_t * pow_term)

    if needs_mask:
        tile_rows = combined.shape[0]
        row_ids = jax.lax.broadcasted_iota(jnp.int32, combined.shape, 0)
        col_ids = jax.lax.broadcasted_iota(jnp.int32, combined.shape, 1)
        flat = i * (tile_rows * _LANES) + row_ids * _LANES + col_ids
        combined = jnp.where(flat < n_valid, combined, 0.0)

    # Fold (tile_rows, 128) -> (8, 128) with vreg-wise adds (VPU only);
    # the single expensive cross-lane reduce happens once, in the wrapper.
    tile_rows = combined.shape[0]
    folded = combined.reshape(tile_rows // _SUBLANES, _SUBLANES, _LANES).sum(axis=0)
    acc_ref[...] += folded


def focal_loss_bce(logits, targets, *, alpha=0.25, gamma=2.0,
                   bce_weight=1.0, focal_weight=1.0,
                   target_block_rows=4096):
    """mean-reduced bce_weight*BCEWithLogits + focal_weight*sigmoid_focal_loss."""
    assert logits.shape == targets.shape
    n_elems = 1
    for d in logits.shape:
        n_elems *= int(d)

    x = logits.reshape(-1).astype(jnp.float32)
    t = targets.reshape(-1).astype(jnp.float32)

    # Flatten to a lane-dense (rows, 128) layout.
    rows = _ceil_div(n_elems, _LANES)
    # tile_rows: multiple of 8, capped at ~2 MiB per block (4096 rows * 128 * 4B).
    tile_rows = min(int(target_block_rows), _round_up(rows, _SUBLANES))
    tile_rows = _round_up(tile_rows, _SUBLANES)
    padded_rows = _round_up(rows, tile_rows)
    padded_elems = padded_rows * _LANES
    needs_mask = padded_elems != n_elems
    if needs_mask:
        pad = padded_elems - n_elems
        x = jnp.pad(x, (0, pad))
        t = jnp.pad(t, (0, pad))
    x = x.reshape(padded_rows, _LANES)
    t = t.reshape(padded_rows, _LANES)

    grid = (padded_rows // tile_rows,)

    kernel = functools.partial(
        _focal_bce_kernel,
        alpha=float(alpha),
        gamma=float(gamma),
        bce_weight=float(bce_weight),
        focal_weight=float(focal_weight),
        n_valid=n_elems,
        needs_mask=needs_mask,
    )

    # TODO(synk): on v7x the single 'arbitrary' axis (carried accumulator)
    # serializes on one TensorCore; a leading parallel axis with per-core
    # partial outputs would give ~2x there.
    acc = pl.pallas_call(
        kernel,
        out_shape=jax.ShapeDtypeStruct((_SUBLANES, _LANES), jnp.float32),
        grid_spec=pltpu.PrefetchScalarGridSpec(
            num_scalar_prefetch=0,
            grid=grid,
            in_specs=[
                pl.BlockSpec((tile_rows, _LANES), lambda i: (i, 0)),
                pl.BlockSpec((tile_rows, _LANES), lambda i: (i, 0)),
            ],
            out_specs=pl.BlockSpec((_SUBLANES, _LANES), lambda i: (0, 0)),
        ),
        compiler_params=pltpu.CompilerParams(
            dimension_semantics=("arbitrary",)),
    )(x, t)

    return jnp.sum(acc) * (1.0 / n_elems)


def focal_loss_bce_ref(logits, targets, *, alpha=0.25, gamma=2.0,
                       bce_weight=1.0, focal_weight=1.0):
    x = logits.astype(jnp.float32)
    t = targets.astype(jnp.float32)
    bce = jnp.maximum(x, 0.0) - x * t + jnp.log1p(jnp.exp(-jnp.abs(x)))
    p = jax.nn.sigmoid(x)
    p_t = p * t + (1.0 - p) * (1.0 - t)
    focal = (alpha * t + (1.0 - alpha) * (1.0 - t)) * bce * (1.0 - p_t) ** gamma
    return bce_weight * jnp.mean(bce) + focal_weight * jnp.mean(focal)


if __name__ == "__main__":
    key = jax.random.PRNGKey(0)
    k1, k2 = jax.random.split(key)
    # Small multilabel-classification-style shapes: batch=16, num_classes=128.
    logits = jax.random.normal(k1, (16, 128), dtype=jnp.float32) * 2.0
    targets = (jax.random.uniform(k2, (16, 128)) < 0.3).astype(jnp.float32)

    out = jax.block_until_ready(focal_loss_bce(logits, targets))
    ref = jax.block_until_ready(focal_loss_bce_ref(logits, targets))
    assert jnp.allclose(out, ref, rtol=1e-5, atol=1e-6), (out, ref)

    # Also exercise a non-divisible / masked shape to check the tail path.
    l2 = jax.random.normal(k1, (7, 33), dtype=jnp.float32)
    t2 = (jax.random.uniform(k2, (7, 33)) < 0.3).astype(jnp.float32)
    out2 = jax.block_until_ready(focal_loss_bce(l2, t2))
    ref2 = jax.block_until_ready(focal_loss_bce_ref(l2, t2))
    assert jnp.allclose(out2, ref2, rtol=1e-5, atol=1e-6), (out2, ref2)

    print("KERNEL_OK")
</pallas_src>

<mosaic_0001>
module attributes {stable_mosaic.version = 11 : i64} {
  func.func @_focal_bce_kernel(%arg0: i32, %arg1: memref<16x128xf32, #tpu.memory_space<vmem>>, %arg2: memref<16x128xf32, #tpu.memory_space<vmem>>, %arg3: memref<8x128xf32, #tpu.memory_space<vmem>>) attributes {dimension_semantics = [#tpu.dimension_semantics<arbitrary>], iteration_bounds = array<i64: 1>, scalar_prefetch = 0 : i64, scratch_operands = 0 : i64, tpu.core_type = #tpu.core_type<tc>, window_params = [{transform_indices = @transform_0, window_bounds = array<i64: 16, 128>}, {transform_indices = @transform_1, window_bounds = array<i64: 16, 128>}, {pipeline_mode = #tpu.pipeline_mode<synchronous>, transform_indices = @transform_2, window_bounds = array<i64: 8, 128>}]} {
    %c0_i32 = arith.constant 0 : i32
    %0 = arith.cmpi eq, %arg0, %c0_i32 : i32
    %1 = arith.extui %0 : i1 to i32
    %c0_i32_0 = arith.constant 0 : i32
    %2 = arith.cmpi ne, %1, %c0_i32_0 : i32
    scf.if %2 {
      %cst_21 = arith.constant 0.000000e+00 : f32
      %50 = vector.broadcast %cst_21 : f32 to vector<8x128xf32>
      %c0_22 = arith.constant 0 : index
      %c0_23 = arith.constant 0 : index
      %51 = vector.load %arg3[%c0_22, %c0_23] : memref<8x128xf32, #tpu.memory_space<vmem>>, vector<8x128xf32>
      tpu.vector_store %arg3[%c0_22, %c0_23], %50 {strides = array<i32>} : memref<8x128xf32, #tpu.memory_space<vmem>>, vector<8x128xf32>,
    } else {
    }
    %c0 = arith.constant 0 : index
    %c0_1 = arith.constant 0 : index
    %3 = vector.load %arg1[%c0, %c0_1] : memref<16x128xf32, #tpu.memory_space<vmem>>, vector<16x128xf32>
    %c0_2 = arith.constant 0 : index
    %c0_3 = arith.constant 0 : index
    %4 = vector.load %arg2[%c0_2, %c0_3] : memref<16x128xf32, #tpu.memory_space<vmem>>, vector<16x128xf32>
    %5 = math.absf %3 : vector<16x128xf32>
    %cst = arith.constant 0.000000e+00 : f32
    %6 = vector.broadcast %cst : f32 to vector<16x128xf32>
    %7 = arith.subf %6, %5 : vector<16x128xf32>
    %8 = math.exp %7 : vector<16x128xf32>
    %cst_4 = arith.constant 0.000000e+00 : f32
    %9 = vector.broadcast %cst_4 : f32 to vector<16x128xf32>
    %10 = arith.maximumf %3, %9 : vector<16x128xf32>
    %11 = arith.mulf %3, %4 : vector<16x128xf32>
    %12 = arith.subf %10, %11 : vector<16x128xf32>
    %13 = math.log1p %8 : vector<16x128xf32>
    %14 = arith.addf %12, %13 : vector<16x128xf32>
    %cst_5 = arith.constant 0.000000e+00 : f32
    %15 = vector.broadcast %cst_5 : f32 to vector<16x128xf32>
    %16 = arith.cmpf oge, %3, %15 : vector<16x128xf32>
    %cst_6 = arith.constant 1.000000e+00 : f32
    %17 = vector.broadcast %cst_6 : f32 to vector<16x128xf32>
    %18 = arith.select %16, %17, %8 : vector<16x128xi1>, vector<16x128xf32>
    %cst_7 = arith.constant 1.000000e+00 : f32
    %19 = vector.broadcast %cst_7 : f32 to vector<16x128xf32>
    %20 = arith.addf %19, %8 : vector<16x128xf32>
    %21 = arith.divf %18, %20 : vector<16x128xf32>
    %22 = arith.mulf %21, %4 : vector<16x128xf32>
    %cst_8 = arith.constant 1.000000e+00 : f32
    %23 = vector.broadcast %cst_8 : f32 to vector<16x128xf32>
    %24 = arith.subf %23, %21 : vector<16x128xf32>
    %cst_9 = arith.constant 1.000000e+00 : f32
    %25 = vector.broadcast %cst_9 : f32 to vector<16x128xf32>
    %26 = arith.subf %25, %4 : vector<16x128xf32>
    %27 = arith.mulf %24, %26 : vector<16x128xf32>
    %28 = arith.addf %22, %27 : vector<16x128xf32>
    %cst_10 = arith.constant 1.000000e+00 : f32
    %29 = vector.broadcast %cst_10 : f32 to vector<16x128xf32>
    %30 = arith.subf %29, %28 : vector<16x128xf32>
    %31 = arith.mulf %30, %30 : vector<16x128xf32>
    %cst_11 = arith.constant 2.500000e-01 : f32
    %32 = vector.broadcast %cst_11 : f32 to vector<16x128xf32>
    %33 = arith.mulf %32, %4 : vector<16x128xf32>
    %cst_12 = arith.constant 1.000000e+00 : f32
    %34 = vector.broadcast %cst_12 : f32 to vector<16x128xf32>
    %35 = arith.subf %34, %4 : vector<16x128xf32>
    %cst_13 = arith.constant 7.500000e-01 : f32
    %36 = vector.broadcast %cst_13 : f32 to vector<16x128xf32>
    %37 = arith.mulf %36, %35 : vector<16x128xf32>
    %38 = arith.addf %33, %37 : vector<16x128xf32>
    %cst_14 = arith.constant 1.000000e+00 : f32
    %39 = vector.broadcast %cst_14 : f32 to vector<16x128xf32>
    %40 = arith.mulf %39, %38 : vector<16x128xf32>
    %41 = arith.mulf %40, %31 : vector<16x128xf32>
    %cst_15 = arith.constant 1.000000e+00 : f32
    %42 = vector.broadcast %cst_15 : f32 to vector<16x128xf32>
    %43 = arith.addf %42, %41 : vector<16x128xf32>
    %44 = arith.mulf %14, %43 : vector<16x128xf32>
    %45 = vector.shape_cast %44 : vector<16x128xf32> to vector<2x8x128xf32>
    %cst_16 = arith.constant dense<0.000000e+00> : vector<8x128xf32>
    %46 = vector.multi_reduction <add>, %45, %cst_16 [0] : vector<2x8x128xf32> to vector<8x128xf32>
    %c0_17 = arith.constant 0 : index
    %c0_18 = arith.constant 0 : index
    %47 = vector.load %arg3[%c0_17, %c0_18] : memref<8x128xf32, #tpu.memory_space<vmem>>, vector<8x128xf32>
    %48 = arith.addf %47, %46 : vector<8x128xf32>
    %c0_19 = arith.constant 0 : index
    %c0_20 = arith.constant 0 : index
    %49 = vector.load %arg3[%c0_19, %c0_20] : memref<8x128xf32, #tpu.memory_space<vmem>>, vector<8x128xf32>
    tpu.vector_store %arg3[%c0_19, %c0_20], %48 {strides = array<i32>} : memref<8x128xf32, #tpu.memory_space<vmem>>, vector<8x128xf32>,
    return
  }
  func.func @transform_0(%arg0: i32) -> (i32, i32) {
    %c0_i32 = arith.constant 0 : i32
    %c0_i32_0 = arith.constant 0 : i32
    return %arg0, %c0_i32 : i32, i32
  }
  func.func @transform_1(%arg0: i32) -> (i32, i32) {
    %c0_i32 = arith.constant 0 : i32
    %c0_i32_0 = arith.constant 0 : i32
    return %arg0, %c0_i32 : i32, i32
  }
  func.func @transform_2(%arg0: i32) -> (i32, i32) {
    %c0_i32 = arith.constant 0 : i32
    %c0_i32_0 = arith.constant 0 : i32
    %c0_i32_1 = arith.constant 0 : i32
    return %c0_i32, %c0_i32_0 : i32, i32
  }
}

</mosaic_0001>

<bundles_post_ra>
// kernel: tpu_custom_call.1
= control target key start
LH: loop header
LB: loop body
LE: loop exit
PB: predicated region body
PF: predicated region fallthrough
CT: control target
= control target key end

     0   :  { %7 = vsyncpa [#allocation3], 0  ;;  %s343_s0 = inlined_call_operand.hbm [shape: f32[16,128], index: 0, kind: input, shape index: {}]   ;;  %s344_s1 = inlined_call_operand.hbm [shape: f32[16,128], index: 1, kind: input, shape index: {}]   ;;  %s345_s2 = inlined_call_operand.hbm [shape: f32[8,128], index: 2, kind: output, shape index: {}]  }
   0x1   :  { %8 = vsyncpa [#allocation6], 0 }
   0x2   :  { %9 = vsyncpa [#allocation4], 0  ;;  %s14_s11 = sshll.u32 %s343_s0, 4  ;;  %s267_s12 = smov [#allocation2]   ;;  %s15_s11 = int_to_ptr.hbm [resolvable:$true] %s14_s11 }
   0x3   :  { %s16_s13 = sshll.u32 %s267_s12, 4  ;;  %s27_s16 = sshll.u32 %s344_s1, 4  ;;  %s17_s13 = int_to_ptr.vmem [resolvable:$true] %s16_s13  ;;  %s28_s16 = int_to_ptr.hbm [resolvable:$true] %s27_s16 }
   0x4   :  { %s268_s17 = smov 128   ;;  %s269_s18 = smov 8  }
   0x5   :  { %22 = dma.hbm_to_vmem [thread:$0]  %s15_s11, 256, %s17_s13, [#allocation3], %s268_s17, %s268_s17, %s269_s18  }
   0x6   :  { %s270_s19 = smov [#allocation5]  }
   0x7   :  { %s29_s20 = sshll.u32 %s270_s19, 4  ;;  %s30_s20 = int_to_ptr.vmem [resolvable:$true] %s29_s20 }
   0x8   :  { %35 = dma.hbm_to_vmem [thread:$0]  %s28_s16, 256, %s30_s20, [#allocation6], %s268_s17, %s268_s17, %s269_s18  }
   0x9   :  { %261 = dma.done.wait [#allocation3], 256  }
   0xa   :  { %262 = vsyncadd [#allocation3], 4294967040 }
   0xb   :  { %263 = dma.done.wait [#allocation6], 256  }
   0xc   :  { %264 = vsyncadd [#allocation6], 4294967040  ;;  %v293_v0 = vld [vmem:[#allocation2] sm:$0xff]  ;;  %v295_v1 = vld [vmem:[#allocation2 + $0x8] sm:$0xff]  ;;  %s271_s0 = smov [#allocation7]   ;;  %s160_s23 = sshll.u32 %s345_s2, 4  ;;  %s161_s23 = int_to_ptr.hbm [resolvable:$true] %s160_s23 }
   0xd   :  { %v53_v2 = vand.u32 2147483647, %v293_v0  ;;  %v54_v3 = vand.u32 2147483647, %v295_v1  ;;  %vm87_vm4 = vcmp.ge.f32.partialorder %v293_v0, 0.0  ;;  %vm88_vm5 = vcmp.ge.f32.partialorder %v295_v1, 0.0 }
   0xe   :  { %v51_v30 = vld [vmem:[#allocation5] sm:$0xff]  ;;  %v52_v33 = vld [vmem:[#allocation5 + $0x8] sm:$0xff]  ;;  %v61_v37 = vmax.f32 %v293_v0, 0.0  ;;  %v62_v44 = vmax.f32 %v295_v1, 0.0  ;;  %s158_s1 = sshll.u32 %s271_s0, 4  ;;  %s159_s1 = int_to_ptr.vmem [resolvable:$true] %s158_s1 }
   0xf   :  { %v55_v4 = vsub.f32 0.0, %v53_v2  ;;  %v56_v5 = vsub.f32 0.0, %v54_v3  ;;  %v63_v40 = vmul.f32 %v51_v30, %v293_v0  ;;  %v127_v43 = vsub.f32 1.0, %v51_v30 }
  0x10   :  { %v128_v47 = vsub.f32 1.0, %v52_v33  ;;  %v64_v54 = vmul.f32 %v52_v33, %v295_v1  ;;  %v137_v59 = vmul.f32 0.25, %v51_v30  ;;  %v138_v60 = vmul.f32 0.25, %v52_v33 }
  0x11   :  { %v57_v6 = vmul.f32 1.442695, %v55_v4  ;;  %v59_v7 = vmul.f32 1.442695, %v56_v5  ;;  %v139_v61 = vmul.f32 0.75, %v127_v43 }
  0x12   :  { %v140_v2 = vmul.f32 0.75, %v128_v47 }
  0x13   :  { %177 = vpow2.f32 %v57_v6 }
  0x14   :  { %179 = vpow2.f32 %v59_v7  ;;  %v65_v7 = vsub.f32 %v61_v37, %v63_v40 }
  0x19   :  { %v299_v8 = vpop.eup %177 }
  0x1a   :  { %v301_v9 = vpop.eup %179  ;;  %v67_v10 = vadd.f32 1.0, %v299_v8  ;;  %v70_v23 = vmul.f32 -0.5, %v299_v8  ;;  %v89_v31 = vsel %vm87_vm4, 1.0, %v299_v8  ;;  %v73_v49 = vand.u32 2147483647, %v299_v8 }
  0x1b   :  { %v76_v11 = vadd.f32 1.0, %v301_v9  ;;  %v79_v34 = vmul.f32 -0.5, %v301_v9  ;;  %v90_v35 = vsel %vm88_vm5, 1.0, %v301_v9  ;;  %v82_v55 = vand.u32 2147483647, %v301_v9 }
  0x1c   :  { %181 = vrcp.f32 %v67_v10  ;;  %vm98_vm0 = vweird.f32 %v67_v10  ;;  %v104_v15 = vand.u32 2147483648, %v67_v10  ;;  %v102_v18 = vand.u32 2147483647, %v67_v10 }
  0x1d   :  { %183 = vrcp.f32 %v76_v11  ;;  %v119_v19 = vand.u32 2147483648, %v76_v11  ;;  %vm113_vm2 = vweird.f32 %v76_v11  ;;  %v117_v21 = vand.u32 2147483647, %v76_v11 }
  0x1e   :  { %v105_v25 = vor.u32 1.1754944e-38, %v104_v15  ;;  %185 = vlog2.f32 %v67_v10  ;;  %vm103_vm7 = vcmp.eq.f32.partialorder %v102_v18, 8.507059e+37  ;;  %v71_v45 = vadd.f32 1.0, %v70_v23 }
  0x1f   :  { %v120_v29 = vor.u32 1.1754944e-38, %v119_v19  ;;  %187 = vlog2.f32 %v76_v11  ;;  %vm118_vm9 = vcmp.eq.f32.partialorder %v117_v21, 8.507059e+37  ;;  %v80_v50 = vadd.f32 1.0, %v79_v34 }
  0x20   :  { %v72_v63 = vmul.f32 %v299_v8, %v71_v45  ;;  %vm333_vm10 = vcmp.lt.f32.partialorder %v73_v49, 0.0004427343  ;;  %vm83_vm11 = vcmp.lt.f32.partialorder %v82_v55, 0.0004427343 }
  0x21   :  { %v81_v1 = vmul.f32 %v301_v9, %v80_v50 }
  0x22   :  { %v182_v12 = vpop.eup %181 }
  0x23   :  { %v184_v13 = vpop.eup %183  ;;  %v94_v14 = vmul.f32 %v182_v12, %v67_v10  ;;  %vm99_vm1 = vweird.f32 %v182_v12 }
  0x24   :  { %v109_v16 = vmul.f32 %v184_v13, %v76_v11  ;;  %vm114_vm3 = vweird.f32 %v184_v13  ;;  %vm309_vm6 = vmor %vm98_vm0, %vm99_vm1  ;;  %v186_v48 = vpop.eup %185  ;;  %v141_v11 = vadd.f32 %v139_v61, %v137_v59 }
  0x25   :  { %v95_v17 = vsub.f32 1.0, %v94_v14  ;;  %vm313_vm8 = vmor %vm113_vm2, %vm114_vm3  ;;  %v188_v53 = vpop.eup %187  ;;  %v69_v62 = vmul.f32 0.6931472, %v186_v48  ;;  %v142_v14 = vadd.f32 %v140_v2, %v138_v60 }
  0x26   :  { %v110_v20 = vsub.f32 1.0, %v109_v16  ;;  %v78_v4 = vmul.f32 0.6931472, %v188_v53 }
  0x27   :  { %v96_v22 = vmul.f32 %v182_v12, %v95_v17 }
  0x28   :  { %v111_v26 = vmul.f32 %v184_v13, %v110_v20  ;;  %v84_v15 = vsel %vm83_vm11, %v81_v1, %v78_v4 }
  0x29   :  { %v97_v27 = vadd.f32 %v182_v12, %v96_v22 }
  0x2a   :  { %v112_v32 = vadd.f32 %v184_v13, %v111_v26 }
  0x2b   :  { %v101_v36 = vsel %vm309_vm6, %v182_v12, %v97_v27  ;;  %v66_v12 = vsub.f32 %v62_v44, %v64_v54 }
  0x2c   :  { %v106_v38 = vsel %vm103_vm7, %v105_v25, %v101_v36  ;;  %v116_v39 = vsel %vm313_vm8, %v184_v13, %v112_v32  ;;  %v75_v13 = vsel %vm333_vm10, %v72_v63, %v69_v62 }
  0x2d   :  { %v107_v41 = vmul.f32 %v106_v38, %v89_v31  ;;  %v121_v42 = vsel %vm118_vm9, %v120_v29, %v116_v39  ;;  %v85_v18 = vadd.f32 %v75_v13, %v65_v7  ;;  %v86_v20 = vadd.f32 %v84_v15, %v66_v12 }
  0x2e   :  { %v122_v46 = vmul.f32 %v121_v42, %v90_v35 }
  0x2f   :  { %v123_v51 = vmul.f32 %v107_v41, %v51_v30  ;;  %v125_v52 = vsub.f32 1.0, %v107_v41 }
  0x30   :  { %v124_v56 = vmul.f32 %v122_v46, %v52_v33  ;;  %v126_v57 = vsub.f32 1.0, %v122_v46 }
  0x31   :  { %v129_v58 = vmul.f32 %v127_v43, %v125_v52 }
  0x32   :  { %v130_v0 = vmul.f32 %v128_v47, %v126_v57 }
  0x33   :  { %v131_v5 = vadd.f32 %v129_v58, %v123_v51 }
  0x34   :  { %v132_v6 = vadd.f32 %v130_v0, %v124_v56 }
  0x35   :  { %v133_v10 = vsub.f32 1.0, %v131_v5 }
  0x36   :  { %v134_v8 = vsub.f32 1.0, %v132_v6 }
  0x37   :  { %v135_v16 = vmul.f32 %v133_v10, %v133_v10 }
  0x38   :  { %v136_v17 = vmul.f32 %v134_v8, %v134_v8 }
  0x39   :  { %v143_v19 = vmul.f32 %v141_v11, %v135_v16 }
  0x3a   :  { %v144_v21 = vmul.f32 %v142_v14, %v136_v17 }
  0x3b   :  { %v145_v9 = vadd.f32 1.0, %v143_v19 }
  0x3c   :  { %v146_v22 = vadd.f32 1.0, %v144_v21 }
  0x3d   :  { %v147_v23 = vmul.f32 %v145_v9, %v85_v18 }
  0x3e   :  { %v148_v24 = vmul.f32 %v146_v22, %v86_v20 }
  0x40   :  { %v149_v25 = vadd.f32 %v148_v24, %v147_v23 }
  0x42   :  { %152 = vst [vmem:[#allocation7] sm:$0xff] %v149_v25 }
  0x43   :  { %163 = dma.vmem_to_hbm [thread:$0]  %s159_s1, 128, %s161_s23, [#allocation4]  }
  0x44   :  { %265 = dma.done.wait [#allocation4], 128  }
  0x45   :  { %266 = vsyncadd [#allocation4], 4294967168 }
  0x46   :  { %168 = vsyncpa [#allocation3], 1 }
  0x47   :  { %169 = vsyncpa [#allocation6], 1 }
  0x48   :  { %170 = vsyncpa [#allocation4], 1 }

</bundles_post_ra>
